<compile_context>
chip_gen: v7x
topology: tpu7x:2x2x1
jax: 0.10.0
libtpu: 0.0.40
codegen_flags: <defaults>
</compile_context>

<pallas_src>
import jax
import jax.numpy as jnp
from jax import lax
from jax.experimental import pallas as pl
from jax.experimental.pallas import tpu as pltpu


def _classification_kernel(x_ref, w_ref, o_ref):
    # x_ref: (TILE_N, F)   w_ref: (C, F)   o_ref: (TILE_N, C)
    # logits = x @ w.T, expressed as a contraction on the shared last dim so the
    # MXU is fed directly (no transpose).
    logits = lax.dot_general(
        x_ref[...], w_ref[...],
        dimension_numbers=(((1,), (1,)), ((), ())),
        preferred_element_type=jnp.float32,
    )  # (TILE_N, C), f32 accumulator
    # numerically-stable log_softmax along the class axis
    m = jnp.max(logits, axis=-1, keepdims=True)
    shifted = logits - m
    lse = jnp.log(jnp.sum(jnp.exp(shifted), axis=-1, keepdims=True))
    o_ref[...] = (shifted - lse).astype(o_ref.dtype)


def classification_forward(embeds, weight, *, tile_n=256):
    """embeds: (N, in_feats), weight: (num_classes, in_feats).
    Returns log-softmax logits (N, num_classes) in float32."""
    N, F = embeds.shape
    C, F2 = weight.shape
    assert F == F2, "feature dims must match"

    # Row tile: multiple of 8 (f32 sublane) or the full N when N is small.
    if N <= tile_n:
        tn = N
    else:
        tn = tile_n  # multiple of 8; Pallas masks the partial last block
    grid_n = pl.cdiv(N, tn)

    # VMEM budget: resident weight + double-buffered x/out tiles (+ headroom).
    itemsize = jnp.dtype(embeds.dtype).itemsize
    vmem_need = (C * F * jnp.dtype(weight.dtype).itemsize
                 + 2 * tn * F * itemsize
                 + 2 * tn * C * 4
                 + (1 << 20))
    vmem_limit = int(min(max(vmem_need, 32 * 2**20), 64 * 2**20))

    cost = pl.CostEstimate(
        flops=2 * N * C * F,
        transcendentals=N * C,  # exp per logit (+ a log per row, negligible)
        bytes_accessed=(embeds.size * itemsize
                        + weight.size * jnp.dtype(weight.dtype).itemsize
                        + N * C * 4),
    )

    return pl.pallas_call(
        _classification_kernel,
        out_shape=jax.ShapeDtypeStruct((N, C), jnp.float32),
        grid_spec=pltpu.PrefetchScalarGridSpec(
            num_scalar_prefetch=0,
            grid=(grid_n,),
            in_specs=[
                # x tiles stream over N (double-buffered by the pipeline)
                pl.BlockSpec((tn, F), lambda i: (i, 0)),
                # weight block index is constant -> stays resident in VMEM
                pl.BlockSpec((C, F), lambda i: (0, 0)),
            ],
            out_specs=pl.BlockSpec((tn, C), lambda i: (i, 0)),
        ),
        compiler_params=pltpu.CompilerParams(
            dimension_semantics=("parallel",),
            vmem_limit_bytes=vmem_limit,
        ),
        cost_estimate=cost,
    )(embeds, weight)


def init_weight(key, num_classes, in_feats, dtype=jnp.float32):
    # kaiming_normal_ (fan_in mode, ReLU gain): std = sqrt(2 / fan_in)
    std = (2.0 / in_feats) ** 0.5
    return (jax.random.normal(key, (num_classes, in_feats), jnp.float32) * std).astype(dtype)


if __name__ == "__main__":
    key = jax.random.PRNGKey(0)
    k_w, k_x = jax.random.split(key)

    # Small shapes consistent with the module (batch of node embeddings).
    N, in_feats, num_classes = 16, 32, 16
    weight = init_weight(k_w, num_classes, in_feats)
    embeds = jax.random.normal(k_x, (N, in_feats), jnp.float32)

    out = classification_forward(embeds, weight)
    jax.block_until_ready(out)

    # reference check in plain JAX
    ref = jax.nn.log_softmax(embeds @ weight.T, axis=1)
    assert out.shape == (N, num_classes)
    assert jnp.allclose(out, ref, atol=1e-5, rtol=1e-5)

    print("KERNEL_OK")
</pallas_src>

<mosaic_0001>
module attributes {stable_mosaic.version = 11 : i64} {
  func.func @_classification_kernel(%arg0: i32, %arg1: memref<16x32xf32, #tpu.memory_space<vmem>>, %arg2: memref<16x32xf32, #tpu.memory_space<vmem>>, %arg3: memref<16x16xf32, #tpu.memory_space<vmem>>) attributes {dimension_semantics = [#tpu.dimension_semantics<parallel>], iteration_bounds = array<i64: 1>, scalar_prefetch = 0 : i64, scratch_operands = 0 : i64, tpu.core_type = #tpu.core_type<tc>, window_params = [{transform_indices = @transform_0, window_bounds = array<i64: 16, 32>}, {pipeline_mode = #tpu.pipeline_mode<synchronous>, transform_indices = @transform_1, window_bounds = array<i64: 16, 32>}, {transform_indices = @transform_2, window_bounds = array<i64: 16, 16>}]} {
    %c0 = arith.constant 0 : index
    %c0_0 = arith.constant 0 : index
    %0 = vector.load %arg1[%c0, %c0_0] : memref<16x32xf32, #tpu.memory_space<vmem>>, vector<16x32xf32>
    %c0_1 = arith.constant 0 : index
    %c0_2 = arith.constant 0 : index
    %1 = vector.load %arg2[%c0_1, %c0_2] : memref<16x32xf32, #tpu.memory_space<vmem>>, vector<16x32xf32>
    %cst = arith.constant dense<0.000000e+00> : vector<16x16xf32>
    %2 = tpu.matmul %0, %1, %cst {dimension_numbers = #tpu.dot_dimension_numbers<[1], [1], [0], [0], [0, 0, 1, 0], [], []>} : vector<16x32xf32>, vector<16x32xf32>, vector<16x16xf32> -> vector<16x16xf32>
    %cst_3 = arith.constant dense<0xFF800000> : vector<16xf32>
    %3 = vector.multi_reduction <maximumf>, %2, %cst_3 [1] : vector<16x16xf32> to vector<16xf32>
    %4 = vector.shape_cast %3 : vector<16xf32> to vector<16x1xf32>
    %5 = vector.broadcast %4 : vector<16x1xf32> to vector<16x16xf32>
    %6 = arith.subf %2, %5 : vector<16x16xf32>
    %7 = math.exp %6 : vector<16x16xf32>
    %cst_4 = arith.constant dense<0.000000e+00> : vector<16xf32>
    %8 = vector.multi_reduction <add>, %7, %cst_4 [1] : vector<16x16xf32> to vector<16xf32>
    %9 = vector.shape_cast %8 : vector<16xf32> to vector<16x1xf32>
    %10 = math.log %9 : vector<16x1xf32>
    %11 = vector.broadcast %10 : vector<16x1xf32> to vector<16x16xf32>
    %12 = arith.subf %6, %11 : vector<16x16xf32>
    %c0_5 = arith.constant 0 : index
    %c0_6 = arith.constant 0 : index
    %13 = vector.load %arg3[%c0_5, %c0_6] : memref<16x16xf32, #tpu.memory_space<vmem>>, vector<16x16xf32>
    tpu.vector_store %arg3[%c0_5, %c0_6], %12 {strides = array<i32>} : memref<16x16xf32, #tpu.memory_space<vmem>>, vector<16x16xf32>,
    return
  }
  func.func @transform_0(%arg0: i32) -> (i32, i32) {
    %c0_i32 = arith.constant 0 : i32
    %c0_i32_0 = arith.constant 0 : i32
    return %arg0, %c0_i32 : i32, i32
  }
  func.func @transform_1(%arg0: i32) -> (i32, i32) {
    %c0_i32 = arith.constant 0 : i32
    %c0_i32_0 = arith.constant 0 : i32
    %c0_i32_1 = arith.constant 0 : i32
    return %c0_i32, %c0_i32_0 : i32, i32
  }
  func.func @transform_2(%arg0: i32) -> (i32, i32) {
    %c0_i32 = arith.constant 0 : i32
    %c0_i32_0 = arith.constant 0 : i32
    return %arg0, %c0_i32 : i32, i32
  }
}

</mosaic_0001>

<bundles_post_ra>
// kernel: tpu_custom_call.1
= control target key start
LH: loop header
LB: loop body
LE: loop exit
PB: predicated region body
PF: predicated region fallthrough
CT: control target
= control target key end

     0   :  { %7 = vsyncpa [#allocation3], 0  ;;  %s354_s0 = inlined_call_operand.hbm [shape: f32[16,32], index: 0, kind: input, shape index: {}]   ;;  %s355_s1 = inlined_call_operand.hbm [shape: f32[16,32], index: 1, kind: input, shape index: {}]   ;;  %s356_s2 = inlined_call_operand.hbm [shape: f32[16,16], index: 2, kind: output, shape index: {}]  }
   0x1   :  { %8 = vsyncpa [#allocation6], 0 }
   0x2   :  { %9 = vsyncpa [#allocation4], 0  ;;  %s283_s9 = smov [#allocation2]   ;;  %s211_s13 = scalar_lea.hbm %s354_s0, 256 }
   0x3   :  { %s15_s10 = sshll.u32 %s283_s9, 4  ;;  %p212_p0 = scmp.ne.s32.totalorder %s354_s0, %s211_s13  ;;  %s16_s10 = int_to_ptr.vmem [resolvable:$true] %s15_s10 }
   0x4   :  { %p215_p1 = scmp.lt.u32.totalorder %s211_s13, %s354_s0 }
   0x6   :  { %p217_p2 = pnand %p215_p1, %p212_p0 }
   0x8   :  { %220 = shalt.err (!%p217_p2)
}
   0x9   :  { %s221_s18 = scalar_lea.vmem %s16_s10, 256  ;;  %p226_p4 = scmp.lt.s32.totalorder %s16_s10, %s16_s10 }
   0xa   :  { %p222_p3 = scmp.ne.s32.totalorder %s16_s10, %s221_s18  ;;  %p227_p5 = scmp.lt.s32.totalorder %s221_s18, %s221_s18 }
   0xc   :  { %p228_p6 = por %p227_p5, %p226_p4 }
   0xe   :  { %p229_p7 = pnand %p228_p6, %p222_p3 }
  0x10   :  { %232 = shalt.err (!%p229_p7)
}
  0x11   :  { %s284_s19 = smov 128   ;;  %s285_s20 = smov 8  }
  0x12   :  { %21 = dma.hbm_to_vmem [thread:$0]  %s354_s0, 256, %s16_s10, [#allocation3], %s284_s19, %s284_s19, %s285_s20  }
  0x13   :  { %s286_s23 = smov [#allocation5]   ;;  %s233_s27 = scalar_lea.hbm %s355_s1, 256 }
  0x14   :  { %s27_s24 = sshll.u32 %s286_s23, 4  ;;  %p234_p8 = scmp.ne.s32.totalorder %s355_s1, %s233_s27  ;;  %s28_s24 = int_to_ptr.vmem [resolvable:$true] %s27_s24 }
  0x15   :  { %p237_p9 = scmp.lt.u32.totalorder %s233_s27, %s355_s1 }
  0x17   :  { %p239_p10 = pnand %p237_p9, %p234_p8 }
  0x19   :  { %242 = shalt.err (!%p239_p10)
}
  0x1a   :  { %s243_s4 = scalar_lea.vmem %s28_s24, 256  ;;  %p248_p12 = scmp.lt.s32.totalorder %s28_s24, %s28_s24 }
  0x1b   :  { %p244_p11 = scmp.ne.s32.totalorder %s28_s24, %s243_s4  ;;  %p249_p13 = scmp.lt.s32.totalorder %s243_s4, %s243_s4 }
  0x1d   :  { %p250_p0 = por %p249_p13, %p248_p12 }
  0x1f   :  { %p251_p1 = pnand %p250_p0, %p244_p11 }
  0x21   :  { %254 = shalt.err (!%p251_p1)
}
  0x22   :  { %33 = dma.hbm_to_vmem [thread:$0]  %s355_s1, 256, %s28_s24, [#allocation6], %s284_s19, %s284_s19, %s285_s20  }
  0x23   :  { %277 = dma.done.wait [#allocation3], 256  }
  0x24   :  { %278 = vsyncadd [#allocation3], 4294967040 }
  0x25   :  { %279 = dma.done.wait [#allocation6], 256  }
  0x26   :  { %280 = vsyncadd [#allocation6], 4294967040  ;;  %vm44_vm0 = vcmask 261120   ;;  %v42_v0 = vld [vmem:[#allocation5] sm:$0xff]  ;;  %v43_v1 = vld [vmem:[#allocation5 + $0x8] sm:$0xff]  ;;  %vm132_vm2 = vcmask 130048  }
  0x27   :  { %vm193_vm1 = vmpackc.low %vm44_vm0, %vm44_vm0  ;;  %v40_v2 = vld [vmem:[#allocation2] sm:$0xff]  ;;  %v192_v3 = vpack.c.bf16 %v43_v1, %v42_v0  ;;  %v41_v4 = vld [vmem:[#allocation2 + $0x8] sm:$0xff]  ;;  %s287_s1 = smov [#allocation7]  }
  0x28   :  { %189 = vmatprep.mubr.msk.f32.mxu0 %vm44_vm0, %v40_v2  ;;  %s164_s6 = sshll.u32 %s287_s1, 4  ;;  %s165_s6 = int_to_ptr.vmem [resolvable:$true] %s164_s6 }
  0x29   :  { %194 = vmatprep.subr.msk.bf16.mxu0 %vm193_vm1, %v192_v3  ;;  %s255_s7 = scalar_lea.vmem %s165_s6, 256  ;;  %p260_p3 = scmp.lt.s32.totalorder %s165_s6, %s165_s6 }
  0x2a   :  { %197 = vmatpush3.bf16.xpose.msk.msra.mxu0 %vm193_vm1, %v192_v3  ;;  %p256_p2 = scmp.ne.s32.totalorder %s165_s6, %s255_s7  ;;  %p261_p4 = scmp.lt.s32.totalorder %s255_s7, %s255_s7 }
  0x2c   :  { %p262_p5 = por %p261_p4, %p260_p3 }
  0x2e   :  { %p263_p6 = pnand %p262_p5, %p256_p2 }
  0x31   :  { %190 = vmatmul.mubr.msk.f32.vlgmr.msra.gmra.mrb[0].mxu0 %vm44_vm0, %v41_v4 }
 0x104   :  { %v191_v5 = vpop.f32.mrb[0].mxu0 }
 0x105   :  { %v123_v6 = vpop.f32.mrb[1].mxu0  ;;  %v136_v8 = vsel %vm132_vm2, %v191_v5, -inf }
 0x106   :  { %v133_v7 = vsel %vm132_vm2, %v123_v6, -inf }
 0x107   :  { %134 = vmax.xlane.f32.xlu0 %v133_v7 }
 0x10b   :  { %137 = vmax.xlane.f32.xlu0 %v136_v8 }
 0x194   :  { %v135_v9 = vpop.xlane.xlu0 %134 }
 0x195   :  { %v139_v10 = vsub.f32 %v123_v6, %v135_v9 }
 0x197   :  { %v141_v11 = vmul.f32 1.442695, %v139_v10 }
 0x198   :  { %v138_v12 = vpop.xlane.xlu0 %137 }
 0x199   :  { %203 = vpow2.f32 %v141_v11  ;;  %v140_v13 = vsub.f32 %v191_v5, %v138_v12 }
 0x19b   :  { %v143_v14 = vmul.f32 1.442695, %v140_v13 }
 0x19d   :  { %205 = vpow2.f32 %v143_v14 }
 0x1a3   :  { %v204_v15 = vpop.eup %203 }
 0x1a4   :  { %v145_v16 = vsel %vm132_vm2, %v204_v15, 0.0 }
 0x1a5   :  { %146 = vadd.xlane.f32.xlu1 %v145_v16 }
 0x1a7   :  { %v206_v17 = vpop.eup %205 }
 0x1a8   :  { %v148_v18 = vsel %vm132_vm2, %v206_v17, 0.0 }
 0x1a9   :  { %149 = vadd.xlane.f32.xlu1 %v148_v18 }
 0x232   :  { %v147_v19 = vpop.xlane.xlu1 %146 }
 0x233   :  { %207 = vlog2.f32 %v147_v19 }
 0x236   :  { %v150_v20 = vpop.xlane.xlu1 %149 }
 0x237   :  { %209 = vlog2.f32 %v150_v20 }
 0x23d   :  { %v208_v21 = vpop.eup %207 }
 0x23e   :  { %v152_v22 = vmul.f32 0.6931472, %v208_v21 }
 0x240   :  { %v155_v23 = vsub.f32 %v139_v10, %v152_v22 }
 0x241   :  { %v210_v24 = vpop.eup %209 }
 0x242   :  { %157 = vst.msk [vmem:[#allocation7] sm:$0xff] %vm132_vm2, %v155_v23  ;;  %v154_v25 = vmul.f32 0.6931472, %v210_v24 }
 0x244   :  { %v156_v26 = vsub.f32 %v140_v13, %v154_v25 }
 0x246   :  { %158 = vst.msk [vmem:[#allocation7 + $0x8] sm:$0xff] %vm132_vm2, %v156_v26 }
 0x247   :  { %266 = shalt.err (!%p263_p6)
}
 0x248   :  { %s267_s10 = scalar_lea.hbm %s356_s2, 256 }
 0x249   :  { %p268_p7 = scmp.ne.s32.totalorder %s356_s2, %s267_s10  ;;  %p271_p8 = scmp.lt.u32.totalorder %s267_s10, %s356_s2 }
 0x24b   :  { %p273_p9 = pnand %p271_p8, %p268_p7 }
 0x24d   :  { %276 = shalt.err (!%p273_p9)
}
 0x24e   :  { %170 = dma.vmem_to_hbm [thread:$0]  %s165_s6, 256, %s356_s2, [#allocation4], %s284_s19, %s284_s19, %s285_s20  }
 0x24f   :  { %281 = dma.done.wait [#allocation4], 256  }
 0x250   :  { %282 = vsyncadd [#allocation4], 4294967040 }
 0x251   :  { %174 = vsyncpa [#allocation3], 1 }
 0x252   :  { %175 = vsyncpa [#allocation6], 1 }
 0x253   :  { %176 = vsyncpa [#allocation4], 1 }

</bundles_post_ra>
